<compile_context>
chip_gen: v7x
topology: tpu7x:2x2x1
jax: 0.10.0
libtpu: 0.0.40
codegen_flags: <defaults>
</compile_context>

<pallas_src>
import jax
import jax.numpy as jnp
from jax.experimental import pallas as pl
from jax.experimental.pallas import tpu as pltpu


def _round_up(a: int, b: int) -> int:
    return (a + b - 1) // b * b


def _cdiv(a: int, b: int) -> int:
    return (a + b - 1) // b


# ----------------------------- kernels --------------------------------------

def _ffwd_kernel_f32out(x_ref, w1_ref, b1_ref, w2_ref, b2_ref, o_ref):
    """f32 output: accumulate directly into o_ref (resident across hidden axis)."""
    hk = pl.program_id(1)

    @pl.when(hk == 0)
    def _init():
        # b2 added exactly once by seeding the accumulator with it.
        o_ref[...] = jnp.broadcast_to(b2_ref[...], o_ref.shape)

    h = jnp.dot(x_ref[...], w1_ref[...], preferred_element_type=jnp.float32)
    h = jnp.maximum(h + b1_ref[...], 0.0)
    o_ref[...] += jnp.dot(h.astype(w2_ref.dtype), w2_ref[...],
                          preferred_element_type=jnp.float32)


def _ffwd_kernel_acc(x_ref, w1_ref, b1_ref, w2_ref, b2_ref, o_ref, acc_ref):
    """Non-f32 output: accumulate in an f32 VMEM scratch, cast once at finalize."""
    hk = pl.program_id(1)

    @pl.when(hk == 0)
    def _init():
        acc_ref[...] = jnp.broadcast_to(b2_ref[...], acc_ref.shape)

    h = jnp.dot(x_ref[...], w1_ref[...], preferred_element_type=jnp.float32)
    h = jnp.maximum(h + b1_ref[...], 0.0)
    acc_ref[...] += jnp.dot(h.astype(w2_ref.dtype), w2_ref[...],
                            preferred_element_type=jnp.float32)

    @pl.when(hk == pl.num_programs(1) - 1)
    def _finalize():
        o_ref[...] = acc_ref[...].astype(o_ref.dtype)


# ------------------------ tiling / budget helpers ----------------------------

_DEFAULT_TILES = {5: (512, 512), 6: (1024, 1024), 7: (512, 512)}  # (tile_m, tile_h)


def _tpu_generation() -> int:
    try:
        kind = jax.devices()[0].device_kind.lower()
    except Exception:
        return 6
    for g in (7, 6, 5):
        if "v%d" % g in kind:
            return g
    return 6


def _vmem_budget(gen: int):
    """Return (vmem_limit_bytes, user_buffer_budget_bytes) per generation."""
    try:
        phys = int(pltpu.get_tpu_info().vmem_capacity_bytes)
    except Exception:
        phys = (64 if gen == 7 else 128) * 2**20
    if gen == 7 or phys <= 64 * 2**20:
        # v7x-class: 64 MiB physical per TC; leave headroom for compiler scratch.
        return 40 * 2**20, 36 * 2**20
    # v5e / v6e: 128 MiB physical.
    return 100 * 2**20, 88 * 2**20


def _pick_tiles(M, C_pad, H, gen, cdt_size, out_size, need_acc, user_budget,
                tile_m, tile_h, wbuf):
    def vmem_bytes(tm, th):
        b = 2 * cdt_size * tm * C_pad                       # x tile (double-buffered)
        b += wbuf * cdt_size * (C_pad * th + th * C_pad)    # w1 + w2 chunks
        b += 2 * 4 * (th + C_pad)                           # f32 bias chunks
        b += 2 * out_size * tm * C_pad                      # output tile
        if need_acc:
            b += 4 * tm * C_pad                             # f32 accumulator
        return b

    dm, dh = _DEFAULT_TILES[gen]
    tm = dm if tile_m is None else int(tile_m)
    th = dh if tile_h is None else int(tile_h)

    # Lane/sublane friendly, clamped for small problems; keep th a multiple of
    # 256 when H allows it (full MXU N on v6e/v7x).
    th = min(th, _round_up(H, 256) if H >= 256 else _round_up(H, 128))
    th = max(128, th // 128 * 128)
    tm = min(tm, _round_up(M, 8))
    tm = max(8, tm // 8 * 8)

    # Fit the VMEM budget: shrink th first (floor 256), then tm, then th again.
    while vmem_bytes(tm, th) > user_budget and th > 256:
        th = max(256, (th // 2) // 128 * 128)
    while vmem_bytes(tm, th) > user_budget and tm > 8:
        tm = max(8, (tm // 2) // 8 * 8)
    while vmem_bytes(tm, th) > user_budget and th > 128:
        th = max(128, (th // 2) // 128 * 128)

    # Minimal-padding row tile (avoid e.g. M=260 padding to 512 rows).
    n_tiles = _cdiv(M, tm)
    tm = max(8, _round_up(_cdiv(M, n_tiles), 8))

    # v7x megacore: make sure the parallel axis has >= 2 row tiles.
    if gen == 7 and _cdiv(M, tm) < 2 and M > 8:
        tm = max(8, _round_up(_cdiv(M, 2), 8))

    return tm, th


# ----------------------------- padding helpers -------------------------------

def _pad2d(a, rows, cols, dtype):
    if a.dtype != dtype:
        a = a.astype(dtype)
    pr, pc = rows - a.shape[0], cols - a.shape[1]
    if pr or pc:
        a = jnp.pad(a, ((0, pr), (0, pc)))
    return a


def _pad_bias(b, n):
    b = b.astype(jnp.float32)
    if b.shape[0] != n:
        b = jnp.pad(b, (0, n - b.shape[0]))
    return b.reshape(1, n)


def prepare_params(w1, b1, w2, b2, *, compute_dtype=jnp.bfloat16):
    """Pre-cast and pre-pad FeedForward params once (store these!) so that
    feed_forward() adds zero per-call cast/pad HBM traffic over the weights."""
    C, H = w1.shape
    C_pad = _round_up(C, 128)
    H_pad = _round_up(H, 128)
    cdt = jnp.dtype(compute_dtype)
    return (_pad2d(w1, C_pad, H_pad, cdt),
            jnp.pad(b1.astype(jnp.float32), (0, H_pad - H)),
            _pad2d(w2, H_pad, C_pad, cdt),
            jnp.pad(b2.astype(jnp.float32), (0, C_pad - C)))


# ------------------------------- entry point ---------------------------------

def feed_forward(x, w1, b1, w2, b2, *, tile_m=None, tile_h=None,
                 compute_dtype=None, weight_buffers=2):
    """FeedForward forward pass: Linear(C->4C) -> ReLU -> Linear(4C->C) -> Dropout.

    x: (B, T, C).  Params may be raw PyTorch shapes (w1 (C,4C), b1 (4C,),
    w2 (4C,C), b2 (C,)) or pre-padded/pre-cast via prepare_params().

    compute_dtype: matmul operand dtype (accumulation always f32).  Defaults to
    the weight dtype -- store weights in bf16 (recommended on v5e/v6e/v7x) and
    the bf16 MXU path is selected automatically.
    weight_buffers: pipeline depth for the w1/w2 streams (2 = standard double
    buffering).  3 can help on v5e f32 paths with exposed DMA; keep 2 on v7x.
    Dropout == identity (eval mode).
    """
    B, T, C = x.shape
    K1, H = w1.shape
    H2, K2 = w2.shape
    assert H2 == H and K1 >= C and K2 >= C, "weight shapes inconsistent with x"
    assert b1.shape == (H,) and b2.shape == (K2,)
    weight_buffers = 2 if weight_buffers is None else max(2, int(weight_buffers))

    out_dtype = x.dtype
    cdt = jnp.dtype(compute_dtype) if compute_dtype is not None else jnp.dtype(w1.dtype)
    need_acc = jnp.dtype(out_dtype) != jnp.float32

    gen = _tpu_generation()
    vmem_limit, user_budget = _vmem_budget(gen)

    M = B * T
    C_pad = _round_up(max(C, K1, K2), 128)
    tm, th = _pick_tiles(M, C_pad, H, gen, cdt.itemsize,
                         jnp.dtype(out_dtype).itemsize, need_acc, user_budget,
                         tile_m, tile_h, weight_buffers)
    M_pad = _round_up(M, tm)
    H_pad = _round_up(H, th)
    grid = (M_pad // tm, H_pad // th)

    # Pad / cast only when actually needed (no-op for prepared params).
    x2d = _pad2d(x.reshape(M, C), M_pad, C_pad, cdt)
    w1p = _pad2d(w1, C_pad, H_pad, cdt)
    w2p = _pad2d(w2, H_pad, C_pad, cdt)
    b1p = _pad_bias(b1, H_pad)
    b2p = _pad_bias(b2, C_pad)

    # Honest HBM-traffic estimate: weights are re-streamed once per row tile.
    cost = pl.CostEstimate(
        flops=4 * M_pad * C_pad * H_pad,
        transcendentals=0,
        bytes_accessed=(cdt.itemsize * M_pad * C_pad
                        + grid[0] * cdt.itemsize * 2 * C_pad * H_pad
                        + 4 * (H_pad + C_pad)
                        + jnp.dtype(out_dtype).itemsize * M_pad * C_pad),
    )

    w_kwargs = {}
    if weight_buffers > 2:
        w_kwargs["pipeline_mode"] = pl.Buffered(weight_buffers)

    kernel = _ffwd_kernel_acc if need_acc else _ffwd_kernel_f32out
    scratch = [pltpu.VMEM((tm, C_pad), jnp.float32)] if need_acc else []

    out2d = pl.pallas_call(
        kernel,
        out_shape=jax.ShapeDtypeStruct((M_pad, C_pad), out_dtype),
        grid_spec=pltpu.PrefetchScalarGridSpec(
            num_scalar_prefetch=0,
            grid=grid,
            in_specs=[
                pl.BlockSpec((tm, C_pad), lambda i, h: (i, 0)),              # x rows
                pl.BlockSpec((C_pad, th), lambda i, h: (0, h), **w_kwargs),  # w1 chunk
                pl.BlockSpec((1, th), lambda i, h: (0, h)),                  # b1 chunk
                pl.BlockSpec((th, C_pad), lambda i, h: (h, 0), **w_kwargs),  # w2 chunk
                pl.BlockSpec((1, C_pad), lambda i, h: (0, 0)),               # b2
            ],
            out_specs=pl.BlockSpec((tm, C_pad), lambda i, h: (i, 0)),
            scratch_shapes=scratch,
        ),
        compiler_params=pltpu.CompilerParams(
            dimension_semantics=("parallel", "arbitrary"),
            vmem_limit_bytes=vmem_limit,
        ),
        cost_estimate=cost,
    )(x2d, w1p, b1p, w2p, b2p)

    return out2d[:M, :C].reshape(B, T, C)


def init_params(key, n_embd):
    """Deterministic init mimicking PyTorch nn.Linear default (uniform +/- 1/sqrt(fan_in))."""
    hidden = 4 * n_embd
    k1, k2, k3, k4 = jax.random.split(key, 4)
    lim1 = 1.0 / jnp.sqrt(n_embd)
    lim2 = 1.0 / jnp.sqrt(hidden)
    w1 = jax.random.uniform(k1, (n_embd, hidden), jnp.float32, -lim1, lim1)
    b1 = jax.random.uniform(k2, (hidden,), jnp.float32, -lim1, lim1)
    w2 = jax.random.uniform(k3, (hidden, n_embd), jnp.float32, -lim2, lim2)
    b2 = jax.random.uniform(k4, (n_embd,), jnp.float32, -lim2, lim2)
    return w1, b1, w2, b2


if __name__ == "__main__":
    # Small shapes: batch=2, seq=8, n_embd=32 (hidden = 128).
    B, T, C = 2, 8, 32
    key = jax.random.PRNGKey(0)
    kx, kp = jax.random.split(key)
    x = jax.random.normal(kx, (B, T, C), jnp.float32)
    w1, b1, w2, b2 = init_params(kp, C)

    ref = (jnp.maximum(x.reshape(-1, C) @ w1 + b1, 0.0) @ w2 + b2).reshape(B, T, C)

    # f32 path (exact check against plain-JAX reference; dropout == identity).
    out = jax.block_until_ready(feed_forward(x, w1, b1, w2, b2))
    assert out.shape == (B, T, C)
    assert jnp.allclose(out, ref, atol=1e-5, rtol=1e-5), "f32 mismatch vs reference"

    # bf16-operand path (f32 accumulation) — looser tolerance.
    out_bf16 = jax.block_until_ready(
        feed_forward(x, w1, b1, w2, b2, compute_dtype=jnp.bfloat16))
    assert out_bf16.shape == (B, T, C)
    assert jnp.allclose(out_bf16, ref, atol=1e-1, rtol=1e-1), "bf16 mismatch vs reference"

    # Recommended production path: weights pre-cast to bf16 and pre-padded once.
    pw1, pb1, pw2, pb2 = prepare_params(w1, b1, w2, b2, compute_dtype=jnp.bfloat16)
    out_prep = jax.block_until_ready(feed_forward(x, pw1, pb1, pw2, pb2))
    assert out_prep.shape == (B, T, C)
    assert jnp.allclose(out_prep, ref, atol=1e-1, rtol=1e-1), "prepared-params mismatch"

    print("KERNEL_OK")
</pallas_src>

<mosaic_0001>
module attributes {stable_mosaic.version = 11 : i64} {
  func.func @_ffwd_kernel_f32out(%arg0: i32, %arg1: i32, %arg2: memref<16x128xf32, #tpu.memory_space<vmem>>, %arg3: memref<128x128xf32, #tpu.memory_space<vmem>>, %arg4: memref<1x128xf32, #tpu.memory_space<vmem>>, %arg5: memref<128x128xf32, #tpu.memory_space<vmem>>, %arg6: memref<1x128xf32, #tpu.memory_space<vmem>>, %arg7: memref<16x128xf32, #tpu.memory_space<vmem>>) attributes {dimension_semantics = [#tpu.dimension_semantics<parallel>, #tpu.dimension_semantics<arbitrary>], iteration_bounds = array<i64: 1, 1>, scalar_prefetch = 0 : i64, scratch_operands = 0 : i64, tpu.core_type = #tpu.core_type<tc>, window_params = [{transform_indices = @transform_0, window_bounds = array<i64: 16, 128>}, {transform_indices = @transform_1, window_bounds = array<i64: 128, 128>}, {transform_indices = @transform_2, window_bounds = array<i64: 1, 128>}, {transform_indices = @transform_3, window_bounds = array<i64: 128, 128>}, {pipeline_mode = #tpu.pipeline_mode<synchronous>, transform_indices = @transform_4, window_bounds = array<i64: 1, 128>}, {transform_indices = @transform_5, window_bounds = array<i64: 16, 128>}]} {
    %c0_i32 = arith.constant 0 : i32
    %0 = arith.cmpi eq, %arg1, %c0_i32 : i32
    %1 = arith.extui %0 : i1 to i32
    %c0_i32_0 = arith.constant 0 : i32
    %2 = arith.cmpi ne, %1, %c0_i32_0 : i32
    scf.if %2 {
      %c0_14 = arith.constant 0 : index
      %c0_15 = arith.constant 0 : index
      %16 = vector.load %arg6[%c0_14, %c0_15] : memref<1x128xf32, #tpu.memory_space<vmem>>, vector<1x128xf32>
      %17 = vector.shape_cast %16 : vector<1x128xf32> to vector<1x128xf32>
      %18 = vector.broadcast %17 : vector<1x128xf32> to vector<16x128xf32>
      %c0_16 = arith.constant 0 : index
      %c0_17 = arith.constant 0 : index
      %19 = vector.load %arg7[%c0_16, %c0_17] : memref<16x128xf32, #tpu.memory_space<vmem>>, vector<16x128xf32>
      tpu.vector_store %arg7[%c0_16, %c0_17], %18 {strides = array<i32>} : memref<16x128xf32, #tpu.memory_space<vmem>>, vector<16x128xf32>,
    } else {
    }
    %c0 = arith.constant 0 : index
    %c0_1 = arith.constant 0 : index
    %3 = vector.load %arg2[%c0, %c0_1] : memref<16x128xf32, #tpu.memory_space<vmem>>, vector<16x128xf32>
    %c0_2 = arith.constant 0 : index
    %c0_3 = arith.constant 0 : index
    %4 = vector.load %arg3[%c0_2, %c0_3] : memref<128x128xf32, #tpu.memory_space<vmem>>, vector<128x128xf32>
    %cst = arith.constant dense<0.000000e+00> : vector<16x128xf32>
    %5 = tpu.matmul %3, %4, %cst {dimension_numbers = #tpu.dot_dimension_numbers<[1], [0], [0], [1], [0, 0, 1, 1], [], []>} : vector<16x128xf32>, vector<128x128xf32>, vector<16x128xf32> -> vector<16x128xf32>
    %c0_4 = arith.constant 0 : index
    %c0_5 = arith.constant 0 : index
    %6 = vector.load %arg4[%c0_4, %c0_5] : memref<1x128xf32, #tpu.memory_space<vmem>>, vector<1x128xf32>
    %7 = vector.broadcast %6 : vector<1x128xf32> to vector<16x128xf32>
    %8 = arith.addf %5, %7 : vector<16x128xf32>
    %cst_6 = arith.constant 0.000000e+00 : f32
    %9 = vector.broadcast %cst_6 : f32 to vector<16x128xf32>
    %10 = arith.maximumf %8, %9 : vector<16x128xf32>
    %c0_7 = arith.constant 0 : index
    %c0_8 = arith.constant 0 : index
    %11 = vector.load %arg7[%c0_7, %c0_8] : memref<16x128xf32, #tpu.memory_space<vmem>>, vector<16x128xf32>
    %c0_9 = arith.constant 0 : index
    %c0_10 = arith.constant 0 : index
    %12 = vector.load %arg5[%c0_9, %c0_10] : memref<128x128xf32, #tpu.memory_space<vmem>>, vector<128x128xf32>
    %cst_11 = arith.constant dense<0.000000e+00> : vector<16x128xf32>
    %13 = tpu.matmul %10, %12, %cst_11 {dimension_numbers = #tpu.dot_dimension_numbers<[1], [0], [0], [1], [0, 0, 1, 1], [], []>} : vector<16x128xf32>, vector<128x128xf32>, vector<16x128xf32> -> vector<16x128xf32>
    %14 = arith.addf %11, %13 : vector<16x128xf32>
    %c0_12 = arith.constant 0 : index
    %c0_13 = arith.constant 0 : index
    %15 = vector.load %arg7[%c0_12, %c0_13] : memref<16x128xf32, #tpu.memory_space<vmem>>, vector<16x128xf32>
    tpu.vector_store %arg7[%c0_12, %c0_13], %14 {strides = array<i32>} : memref<16x128xf32, #tpu.memory_space<vmem>>, vector<16x128xf32>,
    return
  }
  func.func @transform_0(%arg0: i32, %arg1: i32) -> (i32, i32) {
    %c0_i32 = arith.constant 0 : i32
    %c0_i32_0 = arith.constant 0 : i32
    return %arg0, %c0_i32 : i32, i32
  }
  func.func @transform_1(%arg0: i32, %arg1: i32) -> (i32, i32) {
    %c0_i32 = arith.constant 0 : i32
    %c0_i32_0 = arith.constant 0 : i32
    return %c0_i32, %arg1 : i32, i32
  }
  func.func @transform_2(%arg0: i32, %arg1: i32) -> (i32, i32) {
    %c0_i32 = arith.constant 0 : i32
    %c0_i32_0 = arith.constant 0 : i32
    return %c0_i32, %arg1 : i32, i32
  }
  func.func @transform_3(%arg0: i32, %arg1: i32) -> (i32, i32) {
    %c0_i32 = arith.constant 0 : i32
    %c0_i32_0 = arith.constant 0 : i32
    return %arg1, %c0_i32 : i32, i32
  }
  func.func @transform_4(%arg0: i32, %arg1: i32) -> (i32, i32) {
    %c0_i32 = arith.constant 0 : i32
    %c0_i32_0 = arith.constant 0 : i32
    %c0_i32_1 = arith.constant 0 : i32
    return %c0_i32, %c0_i32_0 : i32, i32
  }
  func.func @transform_5(%arg0: i32, %arg1: i32) -> (i32, i32) {
    %c0_i32 = arith.constant 0 : i32
    %c0_i32_0 = arith.constant 0 : i32
    return %arg0, %c0_i32 : i32, i32
  }
}

</mosaic_0001>

<bundles_post_ra>
// kernel: tpu_custom_call.1
= control target key start
LH: loop header
LB: loop body
LE: loop exit
PB: predicated region body
PF: predicated region fallthrough
CT: control target
= control target key end

     0   :  { %10 = vsyncpa [#allocation3], 0  ;;  %s765_s0 = inlined_call_operand.hbm [shape: f32[16,128], index: 0, kind: input, shape index: {}]   ;;  %s766_s1 = inlined_call_operand.hbm [shape: f32[128,128], index: 1, kind: input, shape index: {}]   ;;  %s767_s2 = inlined_call_operand.hbm [shape: f32[1,128], index: 2, kind: input, shape index: {}]   ;;  %s768_s3 = inlined_call_operand.hbm [shape: f32[128,128], index: 3, kind: input, shape index: {}]   ;;  %s769_s4 = inlined_call_operand.hbm [shape: f32[1,128], index: 4, kind: input, shape index: {}]   ;;  %s770_s5 = inlined_call_operand.hbm [shape: f32[16,128], index: 5, kind: output, shape index: {}]  }
   0x1   :  { %11 = vsyncpa [#allocation6], 0 }
   0x2   :  { %12 = vsyncpa [#allocation9], 0 }
   0x3   :  { %13 = vsyncpa [#allocation4], 0  ;;  %s636_s18 = smov [#allocation5]   ;;  %s637_s20 = smov [#allocation8]  }
   0x4   :  { %s31_s19 = sshll.u32 %s636_s18, 4  ;;  %s53_s21 = sshll.u32 %s637_s20, 4  ;;  %s32_s19 = int_to_ptr.vmem [resolvable:$true] %s31_s19  ;;  %s674_s21 = int_to_ptr.vmem [resolvable:$true] %s53_s21 }
   0x5   :  { %s496_s24 = scalar_lea.hbm %s766_s1, 2048 }
   0x6   :  { %p497_p0 = scmp.ne.s32.totalorder %s766_s1, %s496_s24  ;;  %p500_p1 = scmp.lt.u32.totalorder %s496_s24, %s766_s1 }
   0x8   :  { %p502_p2 = pnand %p500_p1, %p497_p0 }
   0xa   :  { %505 = shalt.err (!%p502_p2)
}
   0xb   :  { %s506_s29 = scalar_lea.vmem %s32_s19, 2048  ;;  %p511_p4 = scmp.lt.s32.totalorder %s32_s19, %s32_s19 }
   0xc   :  { %p507_p3 = scmp.ne.s32.totalorder %s32_s19, %s506_s29  ;;  %p512_p5 = scmp.lt.s32.totalorder %s506_s29, %s506_s29 }
   0xe   :  { %p513_p6 = por %p512_p5, %p511_p4 }
  0x10   :  { %p514_p7 = pnand %p513_p6, %p507_p3 }
  0x12   :  { %517 = shalt.err (!%p514_p7)
}
  0x13   :  { %s638_s30 = smov 128   ;;  %s639_s6 = smov 8  }
  0x14   :  { %37 = dma.hbm_to_vmem [thread:$0]  %s766_s1, 2048, %s32_s19, [#allocation6], %s638_s30, %s638_s30, %s639_s6  }
  0x15   :  { %s518_s11 = scalar_lea.hbm %s768_s3, 2048 }
  0x16   :  { %p519_p8 = scmp.ne.s32.totalorder %s768_s3, %s518_s11  ;;  %p522_p9 = scmp.lt.u32.totalorder %s518_s11, %s768_s3 }
  0x18   :  { %p524_p10 = pnand %p522_p9, %p519_p8 }
  0x1a   :  { %527 = shalt.err (!%p524_p10)
}
  0x1b   :  { %s528_s16 = scalar_lea.vmem %s674_s21, 2048  ;;  %p533_p12 = scmp.lt.s32.totalorder %s674_s21, %s674_s21 }
  0x1c   :  { %p529_p11 = scmp.ne.s32.totalorder %s674_s21, %s528_s16  ;;  %p534_p13 = scmp.lt.s32.totalorder %s528_s16, %s528_s16 }
  0x1e   :  { %p535_p0 = por %p534_p13, %p533_p12 }
  0x20   :  { %p536_p1 = pnand %p535_p0, %p529_p11 }
  0x22   :  { %539 = shalt.err (!%p536_p1)
}
  0x23   :  { %59 = dma.hbm_to_vmem [thread:$0]  %s768_s3, 2048, %s674_s21, [#allocation9], %s638_s30, %s638_s30, %s639_s6  }
  0x24   :  { %s640_s18 = smov [#allocation2]   ;;  %s641_s20 = smov [#allocation7]  }
  0x25   :  { %s19_s19 = sshll.u32 %s640_s18, 4  ;;  %s44_s22 = sshll.u32 %s641_s20, 4  ;;  %s20_s19 = int_to_ptr.vmem [resolvable:$true] %s19_s19  ;;  %s45_s22 = int_to_ptr.vmem [resolvable:$true] %s44_s22 }
  0x26   :  { %s540_s25 = scalar_lea.hbm %s765_s0, 256 }
  0x27   :  { %p541_p2 = scmp.ne.s32.totalorder %s765_s0, %s540_s25  ;;  %p544_p3 = scmp.lt.u32.totalorder %s540_s25, %s765_s0 }
  0x29   :  { %p546_p4 = pnand %p544_p3, %p541_p2 }
  0x2b   :  { %549 = shalt.err (!%p546_p4)
}
  0x2c   :  { %s550_s3 = scalar_lea.vmem %s20_s19, 256  ;;  %p555_p6 = scmp.lt.s32.totalorder %s20_s19, %s20_s19 }
  0x2d   :  { %p551_p5 = scmp.ne.s32.totalorder %s20_s19, %s550_s3  ;;  %p556_p7 = scmp.lt.s32.totalorder %s550_s3, %s550_s3 }
  0x2f   :  { %p557_p8 = por %p556_p7, %p555_p6 }
  0x31   :  { %p558_p9 = pnand %p557_p8, %p551_p5 }
  0x33   :  { %561 = shalt.err (!%p558_p9)
}
  0x34   :  { %25 = dma.hbm_to_vmem [thread:$0]  %s765_s0, 256, %s20_s19, [#allocation3], %s638_s30, %s638_s30, %s639_s6  }
  0x35   :  { %s562_s10 = scalar_lea.hbm %s767_s2, 16 }
  0x36   :  { %p563_p10 = scmp.ne.s32.totalorder %s767_s2, %s562_s10  ;;  %p566_p11 = scmp.lt.u32.totalorder %s562_s10, %s767_s2 }
  0x38   :  { %p568_p12 = pnand %p566_p11, %p563_p10 }
  0x3a   :  { %571 = shalt.err (!%p568_p12)
}
  0x3b   :  { %s572_s15 = scalar_lea.vmem %s45_s22, 16  ;;  %s576_s16 = scalar_lea.vmem %s45_s22, 32 }
  0x3c   :  { %p573_p13 = scmp.ne.s32.totalorder %s45_s22, %s572_s15  ;;  %p577_p0 = scmp.lt.s32.totalorder %s45_s22, %s45_s22 }
  0x3d   :  { %p578_p1 = scmp.lt.s32.totalorder %s576_s16, %s572_s15 }
  0x3f   :  { %p579_p2 = por %p578_p1, %p577_p0 }
  0x41   :  { %p580_p3 = pnand %p579_p2, %p573_p13 }
  0x43   :  { %583 = shalt.err (!%p580_p3)
}
  0x44   :  { %47 = dma.hbm_to_vmem [thread:$0]  %s767_s2, 16, %s45_s22, [#allocation6]  }
  0x45   :  { %s642_s17 = smov [#allocation10]   ;;  %s584_s23 = scalar_lea.hbm %s769_s4, 16 }
  0x46   :  { %s66_s18 = sshll.u32 %s642_s17, 4  ;;  %p585_p4 = scmp.ne.s32.totalorder %s769_s4, %s584_s23  ;;  %s67_s18 = int_to_ptr.vmem [resolvable:$true] %s66_s18 }
  0x47   :  { %p588_p5 = scmp.lt.u32.totalorder %s584_s23, %s769_s4 }
  0x49   :  { %p590_p6 = pnand %p588_p5, %p585_p4 }
  0x4b   :  { %593 = shalt.err (!%p590_p6)
}
  0x4c   :  { %s594_s28 = scalar_lea.vmem %s67_s18, 16  ;;  %s598_s2 = scalar_lea.vmem %s67_s18, 32 }
  0x4d   :  { %p595_p7 = scmp.ne.s32.totalorder %s67_s18, %s594_s28  ;;  %p599_p8 = scmp.lt.s32.totalorder %s67_s18, %s67_s18 }
  0x4e   :  { %p600_p9 = scmp.lt.s32.totalorder %s598_s2, %s594_s28 }
  0x50   :  { %p601_p10 = por %p600_p9, %p599_p8 }
  0x52   :  { %p602_p11 = pnand %p601_p10, %p595_p7 }
  0x54   :  { %605 = shalt.err (!%p602_p11)
}
  0x55   :  { %69 = dma.hbm_to_vmem [thread:$0]  %s769_s4, 16, %s67_s18, [#allocation9]  }
  0x56   :  { %628 = dma.done.wait [#allocation3], 256  }
  0x57   :  { %629 = vsyncadd [#allocation3], 4294967040 }
  0x58   :  { %630 = dma.done.wait [#allocation6], 2064  }
  0x59   :  { %631 = vsyncadd [#allocation6], 4294965232 }
  0x5a   :  { %632 = dma.done.wait [#allocation9], 2064  }
  0x5b   :  { %633 = vsyncadd [#allocation9], 4294965232  ;;  %v100_v0 = vld [vmem:[#allocation5] sm:$0xff]  ;;  %v101_v1 = vld [vmem:[#allocation5 + $0x8] sm:$0xff]  ;;  %s643_s4 = smov [#allocation11]  }
  0x5c   :  { %v102_v2 = vld [vmem:[#allocation5 + $0x10] sm:$0xff]  ;;  %v424_v3 = vpack.c.bf16 %v101_v1, %v100_v0  ;;  %v103_v4 = vld [vmem:[#allocation5 + $0x18] sm:$0xff]  ;;  %v104_v6 = vld [vmem:[#allocation5 + $0x20] sm:$0xff]  ;;  %s302_s3 = sshll.u32 %s643_s4, 4  ;;  %s303_s3 = int_to_ptr.vmem [resolvable:$true] %s302_s3 }
  0x5d   :  { %v428_v5 = vpack.c.bf16 %v103_v4, %v102_v2  ;;  %v105_v7 = vld [vmem:[#allocation5 + $0x28] sm:$0xff]  ;;  %v106_v9 = vld [vmem:[#allocation5 + $0x30] sm:$0xff]  ;;  %v107_v10 = vld [vmem:[#allocation5 + $0x38] sm:$0xff]  ;;  %s606_s21 = scalar_lea.vmem %s303_s3, 256  ;;  %p611_p13 = scmp.lt.s32.totalorder %s303_s3, %s303_s3 }
  0x5e   :  { %425 = vmatprep.subr.bf16.mxu0 %v424_v3  ;;  %v432_v8 = vpack.c.bf16 %v105_v7, %v104_v6  ;;  %v98_v11 = vld [vmem:[#allocation2] sm:$0xff]  ;;  %v202_v12 = vld [vmem:[#allocation8] sm:$0xff]  ;;  %v205_v16 = vld [vmem:[#allocation8 + $0x18] sm:$0xff]  ;;  %v436_v20 = vpack.c.bf16 %v107_v10, %v106_v9  ;;  %p607_p12 = scmp.ne.s32.totalorder %s303_s3, %s606_s21  ;;  %p612_p0 = scmp.lt.s32.totalorder %s606_s21, %s606_s21 }
  0x5f   :  { %427 = vmatpush3.bf16.msra.mxu0 %v424_v3  ;;  %386 = vmatprep.mubr.f32.mxu0 %v98_v11  ;;  %v203_v13 = vld [vmem:[#allocation8 + $0x8] sm:$0xff]  ;;  %v204_v14 = vld [vmem:[#allocation8 + $0x10] sm:$0xff]  ;;  %v206_v18 = vld [vmem:[#allocation8 + $0x20] sm:$0xff] }
  0x60   :  { %429 = vmatprep.subr.bf16.mxu0 %v428_v5  ;;  %v456_v15 = vpack.c.bf16 %v203_v13, %v202_v12  ;;  %v460_v17 = vpack.c.bf16 %v205_v16, %v204_v14  ;;  %v207_v19 = vld [vmem:[#allocation8 + $0x28] sm:$0xff]  ;;  %v108_v21 = vld [vmem:[#allocation5 + $0x40] sm:$0xff]  ;;  %v208_v24 = vld [vmem:[#allocation8 + $0x30] sm:$0xff]  ;;  %p613_p1 = por %p612_p0, %p611_p13 }
  0x61   :  { %v109_v22 = vld [vmem:[#allocation5 + $0x48] sm:$0xff]  ;;  %v464_v23 = vpack.c.bf16 %v207_v19, %v206_v18  ;;  %v209_v25 = vld [vmem:[#allocation8 + $0x38] sm:$0xff]  ;;  %v110_v27 = vld [vmem:[#allocation5 + $0x50] sm:$0xff] }
  0x62   :  { %457 = vmatprep.subr.bf16.mxu1 %v456_v15  ;;  %v440_v26 = vpack.c.bf16 %v109_v22, %v108_v21  ;;  %v111_v28 = vld [vmem:[#allocation5 + $0x58] sm:$0xff]  ;;  %v468_v29 = vpack.c.bf16 %v209_v25, %v208_v24  ;;  %v210_v30 = vld [vmem:[#allocation8 + $0x40] sm:$0xff]  ;;  %v211_v31 = vld [vmem:[#allocation8 + $0x48] sm:$0xff]  ;;  %p614_p2 = pnand %p613_p1, %p607_p12 }
  0x63   :  { %431 = vmatpush3.bf16.msra.mxu0 %v428_v5  ;;  %459 = vmatpush3.bf16.msra.mxu1 %v456_v15  ;;  %v444_v32 = vpack.c.bf16 %v111_v28, %v110_v27  ;;  %v112_v33 = vld [vmem:[#allocation5 + $0x60] sm:$0xff]  ;;  %v113_v34 = vld [vmem:[#allocation5 + $0x68] sm:$0xff]  ;;  %v472_v35 = vpack.c.bf16 %v211_v31, %v210_v30  ;;  %v212_v36 = vld [vmem:[#allocation8 + $0x50] sm:$0xff] }
  0x64   :  { %433 = vmatprep.subr.bf16.mxu0 %v432_v8  ;;  %461 = vmatprep.subr.bf16.mxu1 %v460_v17  ;;  %v213_v37 = vld [vmem:[#allocation8 + $0x58] sm:$0xff]  ;;  %v448_v38 = vpack.c.bf16 %v113_v34, %v112_v33  ;;  %v114_v39 = vld [vmem:[#allocation5 + $0x70] sm:$0xff]  ;;  %v214_v42 = vld [vmem:[#allocation8 + $0x60] sm:$0xff] }
  0x65   :  { %v115_v40 = vld [vmem:[#allocation5 + $0x78] sm:$0xff]  ;;  %v476_v41 = vpack.c.bf16 %v213_v37, %v212_v36  ;;  %v215_v43 = vld [vmem:[#allocation8 + $0x68] sm:$0xff]  ;;  %v317_v50 = vld [vmem:[#allocation7] ss:$0 sm:$0xff] }
  0x66   :  { %v452_v44 = vpack.c.bf16 %v115_v40, %v114_v39  ;;  %v480_v45 = vpack.c.bf16 %v215_v43, %v214_v42  ;;  %v99_v46 = vld [vmem:[#allocation2 + $0x8] sm:$0xff]  ;;  %v316_v57 = vld [vmem:[#allocation10] ss:$0 sm:$0xff] }
  0x67   :  { %435 = vmatpush3.bf16.msra.mxu0 %v432_v8  ;;  %463 = vmatpush3.bf16.msra.mxu1 %v460_v17  ;;  %v216_v47 = vld [vmem:[#allocation8 + $0x70] sm:$0xff]  ;;  %v217_v48 = vld [vmem:[#allocation8 + $0x78] sm:$0xff] }
  0x68   :  { %437 = vmatprep.subr.bf16.mxu0 %v436_v20  ;;  %465 = vmatprep.subr.bf16.mxu1 %v464_v23  ;;  %v484_v49 = vpack.c.bf16 %v217_v48, %v216_v47 }
  0x6b   :  { %439 = vmatpush3.bf16.msra.mxu0 %v436_v20  ;;  %467 = vmatpush3.bf16.msra.mxu1 %v464_v23 }
  0x6c   :  { %441 = vmatprep.subr.bf16.mxu0 %v440_v26  ;;  %469 = vmatprep.subr.bf16.mxu1 %v468_v29 }
  0x6f   :  { %443 = vmatpush3.bf16.msra.mxu0 %v440_v26  ;;  %471 = vmatpush3.bf16.msra.mxu1 %v468_v29 }
  0x70   :  { %445 = vmatprep.subr.bf16.mxu0 %v444_v32  ;;  %473 = vmatprep.subr.bf16.mxu1 %v472_v35 }
  0x73   :  { %447 = vmatpush3.bf16.msra.mxu0 %v444_v32  ;;  %475 = vmatpush3.bf16.msra.mxu1 %v472_v35 }
  0x74   :  { %449 = vmatprep.subr.bf16.mxu0 %v448_v38  ;;  %477 = vmatprep.subr.bf16.mxu1 %v476_v41 }
  0x77   :  { %451 = vmatpush3.bf16.msra.mxu0 %v448_v38  ;;  %479 = vmatpush3.bf16.msra.mxu1 %v476_v41 }
  0x78   :  { %453 = vmatprep.subr.bf16.mxu0 %v452_v44  ;;  %481 = vmatprep.subr.bf16.mxu1 %v480_v45 }
  0x7b   :  { %455 = vmatpush3.bf16.msra.mxu0 %v452_v44  ;;  %483 = vmatpush3.bf16.msra.mxu1 %v480_v45 }
  0x7c   :  { %485 = vmatprep.subr.bf16.mxu1 %v484_v49 }
  0x7e   :  { %387 = vmatmul.mubr.f32.vlgmr.msra.gmra.mrb[0].mxu0 %v99_v46 }
  0x7f   :  { %487 = vmatpush3.bf16.msra.mxu1 %v484_v49 }
 0x151   :  { %v388_v51 = vpop.f32.mrb[0].mxu0 }
 0x152   :  { %v195_v52 = vadd.f32 %v388_v51, %v317_v50  ;;  %v189_v53 = vpop.f32.mrb[1].mxu0 }
 0x153   :  { %v190_v54 = vadd.f32 %v317_v50, %v189_v53 }
 0x154   :  { %v199_v56 = vmax.f32 %v195_v52, 0.0 }
 0x155   :  { %v198_v55 = vmax.f32 %v190_v54, 0.0 }
 0x157   :  { %421 = vmatprep.mubr.f32.mxu1 %v198_v55 }
 0x158   :  { %422 = vmatmul.mubr.f32.vlgmr.msra.gmra.mrb[0].mxu1 %v199_v56 }
 0x22b   :  { %v423_v58 = vpop.f32.mrb[0].mxu1 }
 0x22c   :  { %v294_v59 = vadd.f32 %v423_v58, %v316_v57  ;;  %v284_v60 = vpop.f32.mrb[1].mxu1 }
 0x22d   :  { %v293_v61 = vadd.f32 %v316_v57, %v284_v60 }
 0x22e   :  { %296 = vst [vmem:[#allocation11 + $0x8] sm:$0xff] %v294_v59 }
 0x22f   :  { %295 = vst [vmem:[#allocation11] sm:$0xff] %v293_v61 }
 0x230   :  { %617 = shalt.err (!%p614_p2)
}
 0x231   :  { %s618_s9 = scalar_lea.hbm %s770_s5, 256 }
 0x232   :  { %p619_p3 = scmp.ne.s32.totalorder %s770_s5, %s618_s9  ;;  %p622_p4 = scmp.lt.u32.totalorder %s618_s9, %s770_s5 }
 0x234   :  { %p624_p5 = pnand %p622_p4, %p619_p3 }
 0x236   :  { %627 = shalt.err (!%p624_p5)
}
 0x237   :  { %308 = dma.vmem_to_hbm [thread:$0]  %s303_s3, 256, %s770_s5, [#allocation4], %s638_s30, %s638_s30, %s639_s6  }
 0x238   :  { %634 = dma.done.wait [#allocation4], 256  }
 0x239   :  { %635 = vsyncadd [#allocation4], 4294967040 }
 0x23a   :  { %312 = vsyncpa [#allocation3], 1 }
 0x23b   :  { %313 = vsyncpa [#allocation6], 1 }
 0x23c   :  { %314 = vsyncpa [#allocation9], 1 }
 0x23d   :  { %315 = vsyncpa [#allocation4], 1 }

</bundles_post_ra>
